<compile_context>
chip_gen: v7x
topology: tpu7x:2x2x1
jax: 0.10.0
libtpu: 0.0.40
codegen_flags: <defaults>
</compile_context>

<pallas_src>
import functools

import jax
import jax.numpy as jnp
from jax.experimental import pallas as pl
from jax.experimental.pallas import tpu as pltpu


# ----------------------------------------------------------------------------
# Pallas kernels
# ----------------------------------------------------------------------------
def _matmul_bn_kernel(x_ref, w_ref, scale_ref, shift_ref, o_ref, acc_ref, *,
                      apply_relu):
    """acc = X @ W ; out = relu?(acc * scale + shift).

    NOTE: correctness relies on the K axis being the *innermost* grid axis and
    marked "arbitrary" (acc zeroed at k == 0, flushed at k == last).
    """
    k = pl.program_id(2)

    @pl.when(k == 0)
    def _():
        acc_ref[...] = jnp.zeros_like(acc_ref)

    acc_ref[...] += jnp.dot(x_ref[...], w_ref[...],
                            preferred_element_type=jnp.float32)

    @pl.when(k == pl.num_programs(2) - 1)
    def _():
        y = acc_ref[...] * scale_ref[...] + shift_ref[...]
        if apply_relu:
            y = jnp.maximum(y, 0.0)
        o_ref[...] = y.astype(o_ref.dtype)


def _matmul_bn_res_kernel(x_ref, w_ref, scale_ref, shift_ref, res_ref, o_ref,
                          acc_ref, *, apply_relu):
    """acc = X @ W ; out = relu?(acc * scale + shift + residual)."""
    k = pl.program_id(2)

    @pl.when(k == 0)
    def _():
        acc_ref[...] = jnp.zeros_like(acc_ref)

    acc_ref[...] += jnp.dot(x_ref[...], w_ref[...],
                            preferred_element_type=jnp.float32)

    @pl.when(k == pl.num_programs(2) - 1)
    def _():
        y = (acc_ref[...] * scale_ref[...] + shift_ref[...]
             + res_ref[...].astype(jnp.float32))
        if apply_relu:
            y = jnp.maximum(y, 0.0)
        o_ref[...] = y.astype(o_ref.dtype)


def _max_reduce_kernel(p_ref, o_ref):
    # p: (9, TM, C) window patches -> max over the window axis.
    o_ref[...] = jnp.max(p_ref[...], axis=0)


def _gap_kernel(x_ref, o_ref):
    # x: (B, H*W, C) channel-last -> f32 mean over the spatial axis.
    o_ref[...] = jnp.mean(x_ref[...].astype(jnp.float32), axis=1)


# ----------------------------------------------------------------------------
# Helpers (glue: padding / im2col / parameter folding stay in plain JAX)
# ----------------------------------------------------------------------------
def _ru(x, m):
    return ((x + m - 1) // m) * m


def _pad2(a, rows, cols, val=0.0):
    return jnp.pad(a, ((0, rows - a.shape[0]), (0, cols - a.shape[1])),
                   constant_values=val)


def _im2col(x, kh, kw, stride, pad):
    """x: (B,H,W,C) NHWC -> (B*Ho*Wo, kh*kw*C) patches (zero padding)."""
    if pad > 0:
        x = jnp.pad(x, ((0, 0), (pad, pad), (pad, pad), (0, 0)))
    B, H, W, C = x.shape
    Ho = (H - kh) // stride + 1
    Wo = (W - kw) // stride + 1
    cols = []
    for i in range(kh):
        for j in range(kw):
            cols.append(x[:, i:i + stride * (Ho - 1) + 1:stride,
                          j:j + stride * (Wo - 1) + 1:stride, :])
    patches = jnp.stack(cols, axis=3)                 # (B,Ho,Wo,kh*kw,C)
    return patches.reshape(B * Ho * Wo, kh * kw * C), (B, Ho, Wo)


def _choose_k_tiling(K):
    """Small K -> one full-extent block (pad only to a multiple of 16);
    large K -> 512-wide slices when they divide K, else 256-aligned slices
    (v6e/v7x MXU is 256 deep; <=11% zero-pad for ResNet-18's K values)."""
    if K <= 1024:
        Kp = _ru(K, 16)
        return Kp, Kp
    if K % 512 == 0:
        return K, 512
    Kp = _ru(K, 256)
    return Kp, 256


def _choose_n_tiling(N):
    """Lane-dense, full-N output tiles (every ResNet-18 layer has N <= 512)."""
    Np = _ru(N, 128)
    return Np, min(Np, 512)


def _choose_m_tiling(M, single_n_tile):
    """TM up to 512.  When the N grid axis collapses to a single tile, split M
    into >= 2 "parallel" tiles so both v7x TensorCores get work (a no-op cost
    on single-TC v5e/v6e)."""
    TM_MAX = 512
    Mp = _ru(M, 16)
    if Mp <= TM_MAX:
        if single_n_tile and Mp >= 32:
            Mp = _ru(M, 32)
            return Mp, Mp // 2
        return Mp, Mp
    Mp = _ru(M, TM_MAX)
    if (Mp - M) * 4 <= Mp:          # <25% padding waste with 512-row tiles
        return Mp, TM_MAX
    return _ru(M, 256), 256


def conv_bn(x, p, stride, pad, relu=True, residual=None):
    """Fused conv + BN(+residual)(+ReLU) via the tiled Pallas GEMM kernel."""
    kh, kw = p["kh"], p["kw"]
    cols, (B, Ho, Wo) = _im2col(x, kh, kw, stride, pad)

    M = cols.shape[0]
    K, N = p["K"], p["N"]
    Kp, TK, Np, TN = p["Kp"], p["TK"], p["Np"], p["TN"]
    Mp, TM = _choose_m_tiling(M, single_n_tile=(Np == TN))

    # Only activations are padded/cast here; weights & BN params were
    # pre-padded and pre-cast at init time.
    Xp = _pad2(cols.astype(jnp.bfloat16), Mp, Kp)

    grid = (Mp // TM, Np // TN, Kp // TK)   # K innermost ("arbitrary")
    in_specs = [
        pl.BlockSpec((TM, TK), lambda i, j, k: (i, k)),   # X patches
        pl.BlockSpec((TK, TN), lambda i, j, k: (k, j)),   # W (pre-padded bf16)
        pl.BlockSpec((1, TN), lambda i, j, k: (0, j)),    # BN scale
        pl.BlockSpec((1, TN), lambda i, j, k: (0, j)),    # BN shift
    ]
    out_spec = pl.BlockSpec((TM, TN), lambda i, j, k: (i, j))

    if residual is None:
        kernel = functools.partial(_matmul_bn_kernel, apply_relu=relu)
        inputs = (Xp, p["w"], p["scale"], p["shift"])
    else:
        Rp = _pad2(residual.reshape(M, N).astype(jnp.bfloat16), Mp, Np)
        kernel = functools.partial(_matmul_bn_res_kernel, apply_relu=relu)
        inputs = (Xp, p["w"], p["scale"], p["shift"], Rp)
        in_specs = in_specs + [pl.BlockSpec((TM, TN), lambda i, j, k: (i, j))]

    out = pl.pallas_call(
        kernel,
        out_shape=jax.ShapeDtypeStruct((Mp, Np), jnp.bfloat16),
        grid_spec=pltpu.PrefetchScalarGridSpec(
            num_scalar_prefetch=0,
            grid=grid,
            in_specs=in_specs,
            out_specs=out_spec,
            scratch_shapes=[pltpu.VMEM((TM, TN), jnp.float32)],
        ),
        compiler_params=pltpu.CompilerParams(
            # M/N parallel (megacore sharding), K arbitrary (accumulator).
            dimension_semantics=("parallel", "parallel", "arbitrary")),
    )(*inputs)

    # Padded M rows / N cols hold relu(shift) garbage -- must be sliced off.
    return out[:M, :N].reshape(B, Ho, Wo, N)


def maxpool_3x3_s2_p1(x):
    B, H, W, C = x.shape
    xp = jnp.pad(x, ((0, 0), (1, 1), (1, 1), (0, 0)),
                 constant_values=-jnp.inf)
    Hp, Wp = H + 2, W + 2
    Ho = (Hp - 3) // 2 + 1
    Wo = (Wp - 3) // 2 + 1
    cols = []
    for i in range(3):
        for j in range(3):
            cols.append(xp[:, i:i + 2 * (Ho - 1) + 1:2,
                           j:j + 2 * (Wo - 1) + 1:2, :])
    M = B * Ho * Wo
    patches = jnp.stack(cols, axis=0).reshape(9, M, C)

    # Lane-dense layout: fold pairs of output positions into the lane dim so
    # the store is an unmasked 128-lane vst instead of a masked 64-lane one.
    fold = 2 if (C == 64 and M % 2 == 0) else 1
    Mf, Cf = M // fold, C * fold
    patches = patches.reshape(9, Mf, Cf)

    TMr = 512
    Mp = _ru(Mf, 16)
    if Mp <= TMr:
        TMr = Mp
    else:
        Mp = _ru(Mf, TMr)
    patches = jnp.pad(patches, ((0, 0), (0, Mp - Mf), (0, 0)))

    out = pl.pallas_call(
        _max_reduce_kernel,
        out_shape=jax.ShapeDtypeStruct((Mp, Cf), x.dtype),
        grid_spec=pltpu.PrefetchScalarGridSpec(
            num_scalar_prefetch=0,
            grid=(Mp // TMr,),
            in_specs=[pl.BlockSpec((9, TMr, Cf), lambda i: (0, i, 0))],
            out_specs=pl.BlockSpec((TMr, Cf), lambda i: (i, 0)),
        ),
        compiler_params=pltpu.CompilerParams(
            dimension_semantics=("parallel",)),
    )(patches)
    return out[:Mf].reshape(B, Ho, Wo, C)


def global_avg_pool(x):
    # Channel-last layout, reduce the spatial axis in f32 (no wrapper transpose).
    B, H, W, C = x.shape
    xr = x.reshape(B, H * W, C)
    return pl.pallas_call(
        _gap_kernel,
        out_shape=jax.ShapeDtypeStruct((B, C), jnp.float32),
    )(xr)


# ----------------------------------------------------------------------------
# Deterministic parameter init (synthetic weights; BN folded to scale/shift,
# weights pre-padded and pre-cast to bf16 so the forward pass never touches
# them again).
# ----------------------------------------------------------------------------
def _conv_params(key, kh, kw, cin, cout):
    wk, gk, bk, mk, vk = jax.random.split(key, 5)
    K, N = kh * kw * cin, cout
    w = (jax.random.normal(wk, (kh, kw, cin, cout), jnp.float32)
         * jnp.sqrt(2.0 / (kh * kw * cin)))
    gamma = 1.0 + 0.1 * jax.random.normal(gk, (cout,), jnp.float32)
    beta = 0.1 * jax.random.normal(bk, (cout,), jnp.float32)
    mean = 0.1 * jax.random.normal(mk, (cout,), jnp.float32)
    var = jax.random.uniform(vk, (cout,), jnp.float32, 0.5, 1.5)
    scale = gamma / jnp.sqrt(var + 1e-5)
    shift = beta - mean * scale

    Kp, TK = _choose_k_tiling(K)
    Np, TN = _choose_n_tiling(N)
    Wp = _pad2(w.reshape(K, N).astype(jnp.bfloat16), Kp, Np)
    sp = _pad2(scale.reshape(1, N), 1, Np)
    bp = _pad2(shift.reshape(1, N), 1, Np)
    return dict(w=Wp, scale=sp, shift=bp, kh=kh, kw=kw,
                K=K, N=N, Kp=Kp, TK=TK, Np=Np, TN=TN)


def init_resnet18_params(key):
    keys = iter(jax.random.split(key, 64))
    params = {"conv1": _conv_params(next(keys), 7, 7, 3, 64)}
    layers = []
    cin = 64
    for cout, n_blocks, stride in [(64, 2, 1), (128, 2, 2),
                                   (256, 2, 2), (512, 2, 2)]:
        layer = []
        for b in range(n_blocks):
            s = stride if b == 0 else 1
            blk = {"conv1": _conv_params(next(keys), 3, 3, cin, cout),
                   "conv2": _conv_params(next(keys), 3, 3, cout, cout),
                   "stride": s}
            if s != 1 or cin != cout:
                blk["down"] = _conv_params(next(keys), 1, 1, cin, cout)
            layer.append(blk)
            cin = cout
        layers.append(layer)
    params["layers"] = layers
    return params


# ----------------------------------------------------------------------------
# FeatureExtractor.forward
# ----------------------------------------------------------------------------
def feature_extractor_forward(x_nchw, params):
    # x_nchw: (B, 3, H, W) float32 (PyTorch convention) -> (B, 512) float32
    x = jnp.transpose(x_nchw, (0, 2, 3, 1)).astype(jnp.bfloat16)   # NHWC bf16
    # stem: conv7x7/2 + BN + ReLU + maxpool3x3/2
    x = conv_bn(x, params["conv1"], stride=2, pad=3, relu=True)
    x = maxpool_3x3_s2_p1(x)
    # layer1..layer4 (BasicBlocks)
    for layer in params["layers"]:
        for blk in layer:
            identity = x
            s = blk["stride"]
            out = conv_bn(x, blk["conv1"], stride=s, pad=1, relu=True)
            if "down" in blk:
                identity = conv_bn(x, blk["down"], stride=s, pad=0, relu=False)
            x = conv_bn(out, blk["conv2"], stride=1, pad=1, relu=True,
                        residual=identity)
    # AdaptiveAvgPool2d((1,1)) + view(B, -1)
    return global_avg_pool(x)


if __name__ == "__main__":
    key = jax.random.PRNGKey(0)
    pkey, xkey = jax.random.split(key)
    params = init_resnet18_params(pkey)
    # small NCHW input consistent with a 3-channel image classifier
    x = jax.random.normal(xkey, (2, 3, 16, 16), jnp.float32)

    feats = feature_extractor_forward(x, params)
    feats = jax.block_until_ready(feats)

    assert feats.shape == (2, 512), feats.shape
    assert bool(jnp.all(jnp.isfinite(feats)))
    print("KERNEL_OK")
</pallas_src>

<mosaic_0001>
module attributes {stable_mosaic.version = 11 : i64} {
  func.func @_matmul_bn_kernel(%arg0: i32, %arg1: i32, %arg2: i32, %arg3: memref<64x160xbf16, #tpu.memory_space<vmem>>, %arg4: memref<160x128xbf16, #tpu.memory_space<vmem>>, %arg5: memref<1x128xf32, #tpu.memory_space<vmem>>, %arg6: memref<1x128xf32, #tpu.memory_space<vmem>>, %arg7: memref<64x128xbf16, #tpu.memory_space<vmem>>, %arg8: memref<64x128xf32, #tpu.memory_space<vmem>>) attributes {dimension_semantics = [#tpu.dimension_semantics<parallel>, #tpu.dimension_semantics<parallel>, #tpu.dimension_semantics<arbitrary>], iteration_bounds = array<i64: 2, 1, 1>, scalar_prefetch = 0 : i64, scratch_operands = 1 : i64, tpu.core_type = #tpu.core_type<tc>, window_params = [{transform_indices = @transform_0, window_bounds = array<i64: 64, 160>}, {transform_indices = @transform_1, window_bounds = array<i64: 160, 128>}, {transform_indices = @transform_2, window_bounds = array<i64: 1, 128>}, {transform_indices = @transform_3, window_bounds = array<i64: 1, 128>}, {transform_indices = @transform_4, window_bounds = array<i64: 64, 128>}]} {
    %c0_i32 = arith.constant 0 : i32
    %0 = arith.cmpi eq, %arg2, %c0_i32 : i32
    %1 = arith.extui %0 : i1 to i32
    %c0_i32_0 = arith.constant 0 : i32
    %2 = arith.cmpi ne, %1, %c0_i32_0 : i32
    scf.if %2 {
      %cst_10 = arith.constant 0.000000e+00 : f32
      %12 = vector.broadcast %cst_10 : f32 to vector<64x128xf32>
      %c0_11 = arith.constant 0 : index
      %c0_12 = arith.constant 0 : index
      %13 = vector.load %arg8[%c0_11, %c0_12] : memref<64x128xf32, #tpu.memory_space<vmem>>, vector<64x128xf32>
      tpu.vector_store %arg8[%c0_11, %c0_12], %12 {strides = array<i32>} : memref<64x128xf32, #tpu.memory_space<vmem>>, vector<64x128xf32>,
    } else {
    }
    %c0 = arith.constant 0 : index
    %c0_1 = arith.constant 0 : index
    %3 = vector.load %arg8[%c0, %c0_1] : memref<64x128xf32, #tpu.memory_space<vmem>>, vector<64x128xf32>
    %c0_2 = arith.constant 0 : index
    %c0_3 = arith.constant 0 : index
    %4 = vector.load %arg3[%c0_2, %c0_3] : memref<64x160xbf16, #tpu.memory_space<vmem>>, vector<64x160xbf16>
    %c0_4 = arith.constant 0 : index
    %c0_5 = arith.constant 0 : index
    %5 = vector.load %arg4[%c0_4, %c0_5] : memref<160x128xbf16, #tpu.memory_space<vmem>>, vector<160x128xbf16>
    %cst = arith.constant dense<0.000000e+00> : vector<64x128xf32>
    %6 = tpu.matmul %4, %5, %cst {dimension_numbers = #tpu.dot_dimension_numbers<[1], [0], [0], [1], [0, 0, 1, 1], [], []>} : vector<64x160xbf16>, vector<160x128xbf16>, vector<64x128xf32> -> vector<64x128xf32>
    %7 = arith.addf %3, %6 : vector<64x128xf32>
    %c0_6 = arith.constant 0 : index
    %c0_7 = arith.constant 0 : index
    %8 = vector.load %arg8[%c0_6, %c0_7] : memref<64x128xf32, #tpu.memory_space<vmem>>, vector<64x128xf32>
    tpu.vector_store %arg8[%c0_6, %c0_7], %7 {strides = array<i32>} : memref<64x128xf32, #tpu.memory_space<vmem>>, vector<64x128xf32>,
    %c0_i32_8 = arith.constant 0 : i32
    %9 = arith.cmpi eq, %arg2, %c0_i32_8 : i32
    %10 = arith.extui %9 : i1 to i32
    %c0_i32_9 = arith.constant 0 : i32
    %11 = arith.cmpi ne, %10, %c0_i32_9 : i32
    scf.if %11 {
      %c0_10 = arith.constant 0 : index
      %c0_11 = arith.constant 0 : index
      %12 = vector.load %arg8[%c0_10, %c0_11] : memref<64x128xf32, #tpu.memory_space<vmem>>, vector<64x128xf32>
      %c0_12 = arith.constant 0 : index
      %c0_13 = arith.constant 0 : index
      %13 = vector.load %arg5[%c0_12, %c0_13] : memref<1x128xf32, #tpu.memory_space<vmem>>, vector<1x128xf32>
      %14 = vector.broadcast %13 : vector<1x128xf32> to vector<64x128xf32>
      %15 = arith.mulf %12, %14 : vector<64x128xf32>
      %c0_14 = arith.constant 0 : index
      %c0_15 = arith.constant 0 : index
      %16 = vector.load %arg6[%c0_14, %c0_15] : memref<1x128xf32, #tpu.memory_space<vmem>>, vector<1x128xf32>
      %17 = vector.broadcast %16 : vector<1x128xf32> to vector<64x128xf32>
      %18 = arith.addf %15, %17 : vector<64x128xf32>
      %cst_16 = arith.constant 0.000000e+00 : f32
      %19 = vector.broadcast %cst_16 : f32 to vector<64x128xf32>
      %20 = arith.maximumf %18, %19 : vector<64x128xf32>
      %21 = arith.truncf %20 : vector<64x128xf32> to vector<64x128xbf16>
      %c0_17 = arith.constant 0 : index
      %c0_18 = arith.constant 0 : index
      %22 = vector.load %arg7[%c0_17, %c0_18] : memref<64x128xbf16, #tpu.memory_space<vmem>>, vector<64x128xbf16>
      tpu.vector_store %arg7[%c0_17, %c0_18], %21 {strides = array<i32>} : memref<64x128xbf16, #tpu.memory_space<vmem>>, vector<64x128xbf16>,
    } else {
    }
    return
  }
  func.func @transform_0(%arg0: i32, %arg1: i32, %arg2: i32) -> (i32, i32) {
    %c0_i32 = arith.constant 0 : i32
    return %arg0, %arg2 : i32, i32
  }
  func.func @transform_1(%arg0: i32, %arg1: i32, %arg2: i32) -> (i32, i32) {
    %c0_i32 = arith.constant 0 : i32
    return %arg2, %arg1 : i32, i32
  }
  func.func @transform_2(%arg0: i32, %arg1: i32, %arg2: i32) -> (i32, i32) {
    %c0_i32 = arith.constant 0 : i32
    %c0_i32_0 = arith.constant 0 : i32
    return %c0_i32, %arg1 : i32, i32
  }
  func.func @transform_3(%arg0: i32, %arg1: i32, %arg2: i32) -> (i32, i32) {
    %c0_i32 = arith.constant 0 : i32
    %c0_i32_0 = arith.constant 0 : i32
    return %c0_i32, %arg1 : i32, i32
  }
  func.func @transform_4(%arg0: i32, %arg1: i32, %arg2: i32) -> (i32, i32) {
    %c0_i32 = arith.constant 0 : i32
    return %arg0, %arg1 : i32, i32
  }
}

</mosaic_0001>

<bundles_post_ra>
// kernel: tpu_custom_call.1
= control target key start
LH: loop header
LB: loop body
LE: loop exit
PB: predicated region body
PF: predicated region fallthrough
CT: control target
= control target key end

     0   :  { %9 = vsyncpa [#allocation4], 0  ;;  %s1225_s0 = inlined_call_operand.vmem [shape: bf16[128,160], index: 0, kind: input, shape index: {}]   ;;  %s1226_s1 = inlined_call_operand.vmem [shape: bf16[160,128], index: 1, kind: input, shape index: {}]   ;;  %s1227_s2 = inlined_call_operand.vmem [shape: f32[1,128], index: 2, kind: input, shape index: {}]   ;;  %s1228_s3 = inlined_call_operand.vmem [shape: f32[1,128], index: 3, kind: input, shape index: {}]   ;;  %s1229_s4 = inlined_call_operand.hbm [shape: bf16[128,128], index: 4, kind: output, shape index: {}]  }
   0x1   :  { %11 = vsyncpa [#allocation4 + $0x1], 0  ;;  %s1057_s15 = smov 0   ;;  %s1059_s16 = smov 0  }
   0x2   :  { %s1061_s17 = smov 0   ;;  %s1063_s18 = smov 0  }
   0x3   :  { %s1065_s19 = smov 0   ;;  %s1067_s20 = smov 0  }
   0x4 LB: > { %s766_s21 = sadd.s32 4294967295, %s1026_s20   ;;  %s767_s22 = sadd.s32 4294967294, %s1026_s20   ;;  %s1026_s20 = sphi %s1067_s20, %s17_s20   ;;  %s1022_s19 = sphi %s1065_s19, %s1236_s19   ;;  %s1018_s18 = sphi %s1063_s18, %s1235_s18   ;;  %s1014_s17 = sphi %s1061_s17, %s1234_s17   ;;  %s1010_s16 = sphi %s1059_s16, %s1233_s16   ;;  %s1006_s15 = sphi %s1057_s15, %s1232_s15  }
   0x5   : > { %s36_s23 = sadd.s32 1, %s1022_s19  ;;  %s153_s24 = sadd.s32 1, %s1014_s17 }
   0x6   : > { %p38_p0 = scmp.ge.s32.totalorder %s36_s23, 2  ;;  %p163_p1 = scmp.ne.s32.totalorder %s1014_s17, %s1010_s16 }
   0x7   : > { %p164_p2 = scmp.eq.s32.totalorder %s766_s21, 1  ;;  %p169_p3 = scmp.ne.s32.totalorder %s1010_s16, %s1006_s15 }
   0x8   : > { %s1238_s23 = smov (%p38_p0, %s36_s23), 0  ;;  %p170_p5 = scmp.eq.s32.totalorder %s767_s22, 1 }
   0x9   : > { %p1097_p4 = por %p164_p2, %p163_p1  ;;  %s148_s26 = ssub.s32 %s1022_s19, %s1238_s23 }
   0xa   : > { %p773_p6 = scmp.ge.s32.totalorder %s1026_s20, 1  ;;  %p151_p7 = scmp.eq.s32.totalorder %s148_s26, 0 }
   0xb   : > { %p1104_p8 = por %p170_p5, %p169_p3  ;;  %p227_p9 = scmp.lt.s32.totalorder %s1026_s20, 3 }
   0xc   : > { %s1110_s28 = scalar_select %p151_p7, %s1014_s17, %s153_s24  }
   0xd   : > { %p228_p10 = pnand %p773_p6, %p227_p9 }
   0xe   : > { %v926_v0 = vld [vmem:[%s1226_s1] sm:$0xff] (!%p228_p10)   ;;  %v1028_v1 = vmov (!%p228_p10), 0   ;;  %s775_s5 = sshll.u32 (!%p228_p10), %s1018_s18, 3  ;;  %v927_v2 = vld [vmem:[%s1226_s1 + $0x8] sm:$0xff] (!%p228_p10)   ;;  %v928_v3 = vld [vmem:[%s1226_s1 + $0x10] sm:$0xff] (!%p228_p10)   ;;  %vm445_vm0 = vcmask (!%p228_p10), 261120  }
   0xf   : > { %231 = sbr.rel (%p228_p10) target bundleno = 301 (0x12d), region = 36  ;;  %458 = vmatprep.subr.bf16.mxu0 (!%p228_p10), %v1028_v1  ;;  %848 = vmatprep.subr.bf16.mxu1 (!%p228_p10), %v1028_v1  ;;  %p274_p11 = scmp.lt.s32.totalorder (!%p228_p10), %s775_s5, 15  ;;  %v929_v4 = vld [vmem:[%s1226_s1 + $0x18] sm:$0xff] (!%p228_p10)   ;;  %v930_v7 = vld [vmem:[%s1226_s1 + $0x20] sm:$0xff] (!%p228_p10)   ;;  %v931_v8 = vld [vmem:[%s1226_s1 + $0x28] sm:$0xff] (!%p228_p10)  }
  0x10   : > { %459 = vmatpush1.bf16.msra.mxu0 (!%p228_p10), %v926_v0  ;;  %858 = vmatpush1.bf16.msra.mxu1 (!%p228_p10), %v926_v0  ;;  %v932_v9 = vld [vmem:[%s1226_s1 + $0x30] sm:$0xff] (!%p228_p10)   ;;  %v933_v10 = vld [vmem:[%s1226_s1 + $0x38] sm:$0xff] (!%p228_p10)   ;;  %v934_v11 = vld [vmem:[%s1226_s1 + $0x40] sm:$0xff] (!%p228_p10)   ;;  %s269_s24 = sand.u32 (!%p228_p10), 1, %s1010_s16   ;;  %s824_s30 = sshll.u32 (!%p228_p10), %s1018_s18, 9 }
  0x11   : > { %460 = vmatprep.subr.bf16.mxu0 (!%p228_p10), %v1028_v1  ;;  %849 = vmatprep.subr.bf16.mxu1 (!%p228_p10), %v1028_v1  ;;  %v935_v12 = vld [vmem:[%s1226_s1 + $0x48] sm:$0xff] (!%p228_p10)   ;;  %v800_v19 = vld [vmem:[%s1227_s2] ss:$0 sm:$0xff] (!%p228_p10)  ;;  %s1173_s7 = scalar_lea.hbm (!%p228_p10), %s1229_s4, %s824_s30  ;;  %s1179_s18 = scalar_lea.sflag (!%p228_p10), [#allocation4], %s269_s24 }
  0x12   : > { %v801_v21 = vld [vmem:[%s1228_s3] ss:$0 sm:$0xff] (!%p228_p10)  ;;  %s1029_s9 = smov (!%p228_p10), [#allocation3]  }
  0x14   : > { %461 = vmatpush1.bf16.msra.mxu0 (!%p228_p10), %v927_v2  ;;  %859 = vmatpush1.bf16.msra.mxu1 (!%p228_p10), %v927_v2 }
  0x15   : > { %462 = vmatprep.subr.bf16.mxu0 (!%p228_p10), %v1028_v1  ;;  %850 = vmatprep.subr.bf16.mxu1 (!%p228_p10), %v1028_v1 }
  0x16   : > { %s1240_s5 = smov (!%p274_p11, %s775_s5), 15 }
  0x17   : > { %s815_s10 = sshll.u32 %s1240_s5, 3 }
  0x18   : > { %s1125_s13 = scalar_lea.vmem %s1225_s0, %s815_s10  ;;  %463 = vmatpush1.bf16.msra.mxu0 %v928_v3  ;;  %860 = vmatpush1.bf16.msra.mxu1 %v928_v3  ;;  %s952_s10 = sshll.u32 %s1029_s9, 4  ;;  %s953_s10 = int_to_ptr.vmem [resolvable:$false] %s952_s10 }
  0x19   : > { %464 = vmatprep.subr.bf16.mxu0 %v1028_v1  ;;  %851 = vmatprep.subr.bf16.mxu1 %v1028_v1  ;;  %v938_v5 = vld [vmem:[%s1125_s13 + $0x4] ss:$8 sps:$4 sm:$0xff]   ;;  %v936_v13 = vld [vmem:[%s1125_s13] ss:$8 sps:$4 sm:$0xff]   ;;  %v942_v15 = vld [vmem:[%s1125_s13 + $0x14] ss:$8 sps:$4 sm:$0xff]  }
  0x1a   : > { %v941_v6 = vld [vmem:[%s1125_s13 + $0x24] ss:$8 sps:$4 sm:$0xff]   ;;  %796 = vmatprep.mubr.msk.bf16.mxu0 %vm445_vm0, %v938_v5  ;;  %v939_v14 = vld [vmem:[%s1125_s13 + $0x20] ss:$8 sps:$4 sm:$0xff]   ;;  %v944_v16 = vld [vmem:[%s1125_s13 + $0x34] ss:$8 sps:$4 sm:$0xff]  }
  0x1b   : > { %798 = vmatprep.mubr.msk.bf16.mxu1 %vm445_vm0, %v941_v6  ;;  %v946_v17 = vld [vmem:[%s1125_s13 + $0x10] ss:$8 sps:$4 sm:$0xff]   ;;  %s954_s11 = scalar_lea.vmem %s953_s10, 1024 }
  0x1c   : > { %465 = vmatpush1.bf16.msra.mxu0 %v929_v4  ;;  %861 = vmatpush1.bf16.msra.mxu1 %v929_v4  ;;  %v947_v18 = vld [vmem:[%s1125_s13 + $0x30] ss:$8 sps:$4 sm:$0xff]   ;;  %s774_s13 = sshll.u32 %s269_s24, 5 }
  0x1d   : > { %466 = vmatprep.subr.bf16.mxu0 %v1028_v1  ;;  %852 = vmatprep.subr.bf16.mxu1 %v1028_v1  ;;  %s271_s26 = scalar_lea.vmem [#allocation3], %s774_s13 }
  0x1e   : > { %s643_s29 = sshll.u32 %s271_s26, 4  ;;  %s1175_s29 = int_to_ptr.vmem [resolvable:$true] %s643_s29 }
  0x1f   : > { %s948_s8 = scalar_lea.vmem %s1175_s29, 512  ;;  %p955_p1 = scmp.lt.s32.totalorder %s1175_s29, %s953_s10 }
  0x20   : > { %467 = vmatpush1.bf16.msra.mxu0 %v930_v7  ;;  %862 = vmatpush1.bf16.msra.mxu1 %v930_v7  ;;  %p949_p12 = scmp.ne.s32.totalorder %s1175_s29, %s948_s8  ;;  %p956_p2 = scmp.lt.s32.totalorder %s954_s11, %s948_s8 }
  0x21   : > { %468 = vmatprep.subr.bf16.mxu0 %v1028_v1  ;;  %853 = vmatprep.subr.bf16.mxu1 %v1028_v1 }
  0x22   : > { %p950_p13 = pnand %p949_p12, %p1097_p4  ;;  %p957_p3 = por %p956_p2, %p955_p1 }
  0x24   : > { %469 = vmatpush1.bf16.msra.mxu0 %v931_v8  ;;  %863 = vmatpush1.bf16.msra.mxu1 %v931_v8  ;;  %p951_p0 = pneg %p950_p13 }
  0x25   : > { %470 = vmatprep.subr.bf16.mxu0 %v1028_v1  ;;  %854 = vmatprep.subr.bf16.mxu1 %v1028_v1 }
  0x26   : > { %p958_p5 = pnand %p957_p3, %p951_p0 }
  0x28   : > { %471 = vmatpush1.bf16.msra.mxu0 %v932_v9  ;;  %864 = vmatpush1.bf16.msra.mxu1 %v932_v9 }
  0x29   : > { %472 = vmatprep.subr.bf16.mxu0 %v1028_v1  ;;  %855 = vmatprep.subr.bf16.mxu1 %v1028_v1 }
  0x2c   : > { %473 = vmatpush1.bf16.msra.mxu0 %v933_v10  ;;  %865 = vmatpush1.bf16.msra.mxu1 %v933_v10 }
  0x2d   : > { %474 = vmatprep.subr.bf16.mxu0 %v1028_v1  ;;  %856 = vmatprep.subr.bf16.mxu1 %v1028_v1 }
  0x30   : > { %475 = vmatpush1.bf16.msra.mxu0 %v934_v11  ;;  %866 = vmatpush1.bf16.msra.mxu1 %v934_v11 }
  0x31   : > { %476 = vmatprep.subr.bf16.mxu0 %v1028_v1  ;;  %857 = vmatprep.subr.bf16.mxu1 %v1028_v1 }
  0x34   : > { %477 = vmatpush1.bf16.msra.mxu0 %v935_v12  ;;  %867 = vmatpush1.bf16.msra.mxu1 %v935_v12 }
  0x37   : > { %491 = vmatmul.mubr.bf16.vlgmr.msra.gmra.mrb[0].mxu0 %v936_v13  ;;  %507 = vmatmul.mubr.bf16.vlgmr.msra.gmra.mrb[0].mxu1 %v939_v14 }
  0x38   : > { %797 = vmatprep.mubr.msk.bf16.mxu0 %vm445_vm0, %v942_v15  ;;  %799 = vmatprep.mubr.msk.bf16.mxu1 %vm445_vm0, %v944_v16 }
  0x3f   : > { %499 = vmatmul.mubr.bf16.gmra.mrb[4].mxu0 %v946_v17  ;;  %515 = vmatmul.mubr.bf16.gmra.mrb[4].mxu1 %v947_v18 }
 0x10a   : > { %v492_v20 = vpop.f32.mrb[0].mxu0  ;;  %v508_v22 = vpop.f32.mrb[0].mxu1 }
 0x10b   : > { %v557_v23 = vmul.f32 %v800_v19, %v492_v20  ;;  %v561_v24 = vmul.f32 %v800_v19, %v508_v22  ;;  %v494_v25 = vpop.f32.mrb[1].mxu0  ;;  %v510_v26 = vpop.f32.mrb[1].mxu1 }
 0x10c   : > { %v495_v27 = vpop.f32.mrb[2].mxu0  ;;  %v511_v28 = vpop.f32.mrb[2].mxu1 }
 0x10d   : > { %v572_v29 = vadd.f32 %v801_v21, %v557_v23  ;;  %v576_v30 = vadd.f32 %v801_v21, %v561_v24  ;;  %v558_v31 = vmul.f32 %v800_v19, %v495_v27  ;;  %v562_v32 = vmul.f32 %v800_v19, %v511_v28  ;;  %v497_v33 = vpop.f32.mrb[3].mxu0  ;;  %v513_v34 = vpop.f32.mrb[3].mxu1 }
 0x10f   : > { %v573_v35 = vadd.f32 %v801_v21, %v558_v31  ;;  %v577_v36 = vadd.f32 %v801_v21, %v562_v32  ;;  %v580_v37 = vmax.f32 %v572_v29, 0.0  ;;  %v584_v38 = vmax.f32 %v576_v30, 0.0 }
 0x111   : > { %v581_v39 = vmax.f32 %v573_v35, 0.0  ;;  %v585_v40 = vmax.f32 %v577_v36, 0.0 }
 0x112   : > { %v500_v41 = vpop.f32.mrb[4].mxu0  ;;  %v516_v42 = vpop.f32.mrb[4].mxu1 }
 0x113   : > { %v828_v43 = vpack.c.bf16 %v581_v39, %v580_v37  ;;  %v838_v44 = vpack.c.bf16 %v585_v40, %v584_v38  ;;  %v559_v45 = vmul.f32 %v800_v19, %v500_v41  ;;  %v563_v46 = vmul.f32 %v800_v19, %v516_v42  ;;  %v502_v47 = vpop.f32.mrb[5].mxu0  ;;  %v518_v48 = vpop.f32.mrb[5].mxu1 }
 0x114   : > { %v503_v49 = vpop.f32.mrb[6].mxu0  ;;  %v519_v50 = vpop.f32.mrb[6].mxu1 }
 0x115   : > { %829 = vst [vmem:[%s271_s26] sm:$0xff] %v828_v43   ;;  %846 = vst [vmem:[%s271_s26 + $0x10] sm:$0xff] %v838_v44   ;;  %v574_v51 = vadd.f32 %v801_v21, %v559_v45  ;;  %v578_v52 = vadd.f32 %v801_v21, %v563_v46  ;;  %v560_v53 = vmul.f32 %v800_v19, %v503_v49  ;;  %v505_v55 = vpop.f32.mrb[7].mxu0  ;;  %v521_v56 = vpop.f32.mrb[7].mxu1 }
 0x116   : > { %v564_v54 = vmul.f32 %v800_v19, %v519_v50 }
 0x117   : > { %v575_v57 = vadd.f32 %v801_v21, %v560_v53  ;;  %v582_v59 = vmax.f32 %v574_v51, 0.0  ;;  %v586_v60 = vmax.f32 %v578_v52, 0.0 }
 0x118   : > { %v579_v58 = vadd.f32 %v801_v21, %v564_v54 }
 0x119   : > { %v583_v61 = vmax.f32 %v575_v57, 0.0 }
 0x11a   : > { %v587_v62 = vmax.f32 %v579_v58, 0.0 }
 0x11b   : > { %v833_v63 = vpack.c.bf16 %v583_v61, %v582_v59 }
 0x11c   : > { %v843_v0 = vpack.c.bf16 %v587_v62, %v586_v60 }
 0x11d   : > { %845 = vst [vmem:[%s271_s26 + $0x8] sm:$0xff] %v833_v63  }
 0x11e   : > { %847 = vst [vmem:[%s271_s26 + $0x18] sm:$0xff] %v843_v0  }
 0x11f   : > { %961 = shalt.err (!%p958_p5)
}
 0x120   : > { %s962_s12 = scalar_lea.hbm %s1173_s7, 512  ;;  %s966_s22 = scalar_lea.hbm %s1229_s4, 1024 }
 0x121   : > { %p963_p6 = scmp.ne.s32.totalorder %s1173_s7, %s962_s12  ;;  %p967_p10 = scmp.lt.u32.totalorder %s1173_s7, %s1229_s4 }
 0x122   : > { %p968_p11 = scmp.lt.u32.totalorder %s966_s22, %s962_s12  ;;  %p970_p13 = scmp.lt.u32.totalorder %s962_s12, %s1173_s7 }
 0x123   : > { %p964_p7 = pnand %p963_p6, %p1097_p4 }
 0x124   : > { %p969_p12 = por %p968_p11, %p967_p10 }
 0x125   : > { %p965_p9 = pneg %p964_p7 }
 0x126   : > { %p971_p0 = por %p970_p13, %p969_p12 }
 0x128   : > { %p972_p1 = pnand %p971_p0, %p965_p9 }
 0x12a   : > { %975 = shalt.err (!%p972_p1)
}
 0x12b   : > { %s1030_s26 = smov 64   ;;  %s1031_s30 = smov 4  }
 0x12c   : > { %868 = dma.vmem_to_hbm [thread:$0]  (%p1097_p4), %s1175_s29, 512, %s1173_s7, %s1179_s18, %s1030_s26, %s1030_s26, %s1031_s30  }
 0x12d PF: > { %p874_p2 = scmp.ge.s32.totalorder %s1026_s20, 2  ;;  %s658_s5 = sand.u32 1, %s1006_s15  }
 0x12e   : > { %s659_s6 = scalar_lea.sflag [#allocation4], %s658_s5 }
 0x12f   : > { %p871_p3 = pnand %p874_p2, %p1104_p8 }
 0x131   : > { %1001 = dma.done.wait (!%p871_p3), %s659_s6, 512  }
 0x132   : > { %1003 = vsyncadd (!%p871_p3), %s659_s6, 4294966784  ;;  %s17_s20 = sadd.s32 1, %s1026_s20   ;;  %s1232_s15 = smov %s1010_s16 }
 0x133   : > { %p14_p5 = scmp.ge.s32.totalorder %s17_s20, 4   ;;  %s1233_s16 = smov %s1014_s17 }
 0x134   : > { %s1234_s17 = smov %s1110_s28  ;;  %s1235_s18 = smov %s1022_s19 }
 0x135   : > { %s1236_s19 = smov %s1238_s23  ;;  %16 = sbr.rel (!%p14_p5) target bundleno = 4 (0x4), region = 88 }
 0x13c   :  { %664 = vsyncpa [#allocation4], 1 }
 0x13d   :  { %666 = vsyncpa [#allocation4 + $0x1], 1 }

</bundles_post_ra>
